<compile_context>
chip_gen: v7x
topology: tpu7x:2x2x1
jax: 0.10.0
libtpu: 0.0.40
codegen_flags: <defaults>
</compile_context>

<pallas_src>
import jax
import jax.numpy as jnp
from jax.experimental import pallas as pl
from jax.experimental.pallas import tpu as pltpu


def _make_encoder_kernel(has_proj):
    """Build the fused kernel for a stack of residual FC blocks.

    Ref order: x_ref, then per block [w1, b1, w2, b2, (wp, bp if projected
    shortcut)], and finally out_ref.
    """
    n_blocks = len(has_proj)

    def kernel(*refs):
        x_ref, o_ref = refs[0], refs[-1]
        params = iter(refs[1:-1])
        x = x_ref[...]                                        # (B, fin) in vregs
        for i in range(n_blocks):                             # static unroll
            w1 = next(params)[...]                            # (fin,  fexp)
            b1 = next(params)[...]                            # (1,    fexp)
            w2 = next(params)[...]                            # (fexp, fout)
            b2 = next(params)[...]                            # (1,    fout)
            # Linear(fin -> fexp) -> ReLU        (MXU + fused VPU epilogue)
            h = jnp.dot(x, w1, preferred_element_type=jnp.float32) + b1
            h = jnp.maximum(h, 0.0)
            # Dropout: identity at inference.
            # Linear(fexp -> fout)
            y = jnp.dot(h, w2, preferred_element_type=jnp.float32) + b2
            # Residual shortcut (projected iff fin != fout)
            if has_proj[i]:
                wp = next(params)[...]                        # (fin, fout)
                bp = next(params)[...]                        # (1,   fout)
                s = jnp.dot(x, wp, preferred_element_type=jnp.float32) + bp
            else:
                s = x
            x = jnp.maximum(y + s, 0.0)
        o_ref[...] = x.astype(o_ref.dtype)

    return kernel


def residual_fc_encoder_forward(x, params):
    """x: (B, in_feature) f32; params: list of per-block dicts (see make_params).

    Runs the whole encoder in one pallas_call / one grid step; every
    intermediate activation stays on-chip.
    Returns (B, out_feature) f32.
    """
    B = x.shape[0]
    out_feature = params[-1]["w2"].shape[1]

    flat_inputs = [x]
    has_proj = []
    for p in params:
        flat_inputs += [p["w1"], p["b1"], p["w2"], p["b2"]]
        if "wp" in p:
            flat_inputs += [p["wp"], p["bp"]]
            has_proj.append(True)
        else:
            has_proj.append(False)

    def full_spec(arr):
        nd = arr.ndim
        return pl.BlockSpec(arr.shape, lambda i, _nd=nd: (0,) * _nd)

    kernel = _make_encoder_kernel(tuple(has_proj))
    return pl.pallas_call(
        kernel,
        out_shape=jax.ShapeDtypeStruct((B, out_feature), jnp.float32),
        grid_spec=pltpu.PrefetchScalarGridSpec(
            num_scalar_prefetch=0,
            grid=(1,),                               # single fused step
            in_specs=[full_spec(a) for a in flat_inputs],
            out_specs=pl.BlockSpec((B, out_feature), lambda i: (0, 0)),
        ),
        compiler_params=pltpu.CompilerParams(dimension_semantics=("arbitrary",)),
    )(*flat_inputs)


# ----------------------------- parameter construction -----------------------------
def block_dims(in_feature, out_feature, hidden_layer_list):
    """Reproduce the constructor's dim bookkeeping."""
    assert len(hidden_layer_list) % 3 == 1, "hidden_layer_list must be 3n + 1."
    dims = [in_feature] + list(hidden_layer_list) + [out_feature]
    blocks = []
    for i in range(len(dims) // 3):
        blocks.append((dims[3 * i], dims[3 * i + 1], dims[3 * i + 2]))
    for a, b in zip(blocks[:-1], blocks[1:]):
        assert a[2] == b[0], "consecutive ResidualFCBlocks must chain (fout == next fin)."
    return blocks


def make_params(key, in_feature, out_feature, hidden_layer_list):
    """Deterministic params.  Linear weights are stored pre-transposed as
    (fan_in, fan_out) so the kernel computes lane-dense x @ W directly."""
    params = []
    for fin, fexp, fout in block_dims(in_feature, out_feature, hidden_layer_list):
        key, k1, k2, k3, k4, k5, k6 = jax.random.split(key, 7)
        std1 = (2.0 / fin) ** 0.5
        std2 = (2.0 / fexp) ** 0.5
        p = {
            "w1": std1 * jax.random.normal(k1, (fin, fexp), jnp.float32),
            "b1": 0.1 * jax.random.normal(k2, (1, fexp), jnp.float32),
            "w2": std2 * jax.random.normal(k3, (fexp, fout), jnp.float32),
            "b2": 0.1 * jax.random.normal(k4, (1, fout), jnp.float32),
        }
        if fin != fout:  # projected shortcut
            p["wp"] = std1 * jax.random.normal(k5, (fin, fout), jnp.float32)
            p["bp"] = 0.1 * jax.random.normal(k6, (1, fout), jnp.float32)
        params.append(p)
    return params


# ----------------------------- pure-JAX reference -----------------------------
def residual_fc_encoder_ref(x, params):
    for p in params:
        h = jnp.maximum(jnp.dot(x, p["w1"], preferred_element_type=jnp.float32) + p["b1"], 0.0)
        y = jnp.dot(h, p["w2"], preferred_element_type=jnp.float32) + p["b2"]
        if "wp" in p:
            s = jnp.dot(x, p["wp"], preferred_element_type=jnp.float32) + p["bp"]
        else:
            s = x
        x = jnp.maximum(y + s, 0.0)
    return x


if __name__ == "__main__":
    key = jax.random.PRNGKey(0)
    k_x, k_p = jax.random.split(key)

    B = 2
    in_feature = 16
    out_feature = 32
    # len = 4 == 3*1 + 1  ->  two ResidualFCBlocks:
    #   block 0: 16 -> (expand 64) -> 32   (projected shortcut, 16 != 32)
    #   block 1: 32 -> (expand 64) -> 32   (identity shortcut)
    hidden_layer_list = [64, 32, 32, 64]

    x = jax.random.normal(k_x, (B, in_feature), jnp.float32)
    params = make_params(k_p, in_feature, out_feature, hidden_layer_list)

    out = jax.block_until_ready(residual_fc_encoder_forward(x, params))
    assert out.shape == (B, out_feature), out.shape

    ref = jax.block_until_ready(residual_fc_encoder_ref(x, params))
    err = float(jnp.max(jnp.abs(out - ref)))
    assert jnp.allclose(out, ref, atol=1e-4, rtol=1e-4), err

    print("KERNEL_OK")
</pallas_src>

<mosaic_0001>
module attributes {stable_mosaic.version = 11 : i64} {
  func.func @kernel(%arg0: i32, %arg1: memref<2x16xf32, #tpu.memory_space<vmem>>, %arg2: memref<16x64xf32, #tpu.memory_space<vmem>>, %arg3: memref<1x64xf32, #tpu.memory_space<vmem>>, %arg4: memref<64x32xf32, #tpu.memory_space<vmem>>, %arg5: memref<1x32xf32, #tpu.memory_space<vmem>>, %arg6: memref<16x32xf32, #tpu.memory_space<vmem>>, %arg7: memref<1x32xf32, #tpu.memory_space<vmem>>, %arg8: memref<32x64xf32, #tpu.memory_space<vmem>>, %arg9: memref<1x64xf32, #tpu.memory_space<vmem>>, %arg10: memref<64x32xf32, #tpu.memory_space<vmem>>, %arg11: memref<1x32xf32, #tpu.memory_space<vmem>>, %arg12: memref<2x32xf32, #tpu.memory_space<vmem>>) attributes {dimension_semantics = [#tpu.dimension_semantics<arbitrary>], iteration_bounds = array<i64: 1>, scalar_prefetch = 0 : i64, scratch_operands = 0 : i64, tpu.core_type = #tpu.core_type<tc>, window_params = [{pipeline_mode = #tpu.pipeline_mode<synchronous>, transform_indices = @transform_0, window_bounds = array<i64: 2, 16>}, {pipeline_mode = #tpu.pipeline_mode<synchronous>, transform_indices = @transform_1, window_bounds = array<i64: 16, 64>}, {pipeline_mode = #tpu.pipeline_mode<synchronous>, transform_indices = @transform_2, window_bounds = array<i64: 1, 64>}, {pipeline_mode = #tpu.pipeline_mode<synchronous>, transform_indices = @transform_3, window_bounds = array<i64: 64, 32>}, {pipeline_mode = #tpu.pipeline_mode<synchronous>, transform_indices = @transform_4, window_bounds = array<i64: 1, 32>}, {pipeline_mode = #tpu.pipeline_mode<synchronous>, transform_indices = @transform_5, window_bounds = array<i64: 16, 32>}, {pipeline_mode = #tpu.pipeline_mode<synchronous>, transform_indices = @transform_6, window_bounds = array<i64: 1, 32>}, {pipeline_mode = #tpu.pipeline_mode<synchronous>, transform_indices = @transform_7, window_bounds = array<i64: 32, 64>}, {pipeline_mode = #tpu.pipeline_mode<synchronous>, transform_indices = @transform_8, window_bounds = array<i64: 1, 64>}, {pipeline_mode = #tpu.pipeline_mode<synchronous>, transform_indices = @transform_9, window_bounds = array<i64: 64, 32>}, {pipeline_mode = #tpu.pipeline_mode<synchronous>, transform_indices = @transform_10, window_bounds = array<i64: 1, 32>}, {pipeline_mode = #tpu.pipeline_mode<synchronous>, transform_indices = @transform_11, window_bounds = array<i64: 2, 32>}]} {
    %c0 = arith.constant 0 : index
    %c0_0 = arith.constant 0 : index
    %0 = vector.load %arg1[%c0, %c0_0] : memref<2x16xf32, #tpu.memory_space<vmem>>, vector<2x16xf32>
    %c0_1 = arith.constant 0 : index
    %c0_2 = arith.constant 0 : index
    %1 = vector.load %arg2[%c0_1, %c0_2] : memref<16x64xf32, #tpu.memory_space<vmem>>, vector<16x64xf32>
    %c0_3 = arith.constant 0 : index
    %c0_4 = arith.constant 0 : index
    %2 = vector.load %arg3[%c0_3, %c0_4] : memref<1x64xf32, #tpu.memory_space<vmem>>, vector<1x64xf32>
    %c0_5 = arith.constant 0 : index
    %c0_6 = arith.constant 0 : index
    %3 = vector.load %arg4[%c0_5, %c0_6] : memref<64x32xf32, #tpu.memory_space<vmem>>, vector<64x32xf32>
    %c0_7 = arith.constant 0 : index
    %c0_8 = arith.constant 0 : index
    %4 = vector.load %arg5[%c0_7, %c0_8] : memref<1x32xf32, #tpu.memory_space<vmem>>, vector<1x32xf32>
    %cst = arith.constant dense<0.000000e+00> : vector<2x64xf32>
    %5 = tpu.matmul %0, %1, %cst {dimension_numbers = #tpu.dot_dimension_numbers<[1], [0], [0], [1], [0, 0, 1, 1], [], []>} : vector<2x16xf32>, vector<16x64xf32>, vector<2x64xf32> -> vector<2x64xf32>
    %6 = vector.broadcast %2 : vector<1x64xf32> to vector<2x64xf32>
    %7 = arith.addf %5, %6 : vector<2x64xf32>
    %cst_9 = arith.constant 0.000000e+00 : f32
    %8 = vector.broadcast %cst_9 : f32 to vector<2x64xf32>
    %9 = arith.maximumf %7, %8 : vector<2x64xf32>
    %cst_10 = arith.constant dense<0.000000e+00> : vector<2x32xf32>
    %10 = tpu.matmul %9, %3, %cst_10 {dimension_numbers = #tpu.dot_dimension_numbers<[1], [0], [0], [1], [0, 0, 1, 1], [], []>} : vector<2x64xf32>, vector<64x32xf32>, vector<2x32xf32> -> vector<2x32xf32>
    %11 = vector.broadcast %4 : vector<1x32xf32> to vector<2x32xf32>
    %12 = arith.addf %10, %11 : vector<2x32xf32>
    %c0_11 = arith.constant 0 : index
    %c0_12 = arith.constant 0 : index
    %13 = vector.load %arg6[%c0_11, %c0_12] : memref<16x32xf32, #tpu.memory_space<vmem>>, vector<16x32xf32>
    %c0_13 = arith.constant 0 : index
    %c0_14 = arith.constant 0 : index
    %14 = vector.load %arg7[%c0_13, %c0_14] : memref<1x32xf32, #tpu.memory_space<vmem>>, vector<1x32xf32>
    %cst_15 = arith.constant dense<0.000000e+00> : vector<2x32xf32>
    %15 = tpu.matmul %0, %13, %cst_15 {dimension_numbers = #tpu.dot_dimension_numbers<[1], [0], [0], [1], [0, 0, 1, 1], [], []>} : vector<2x16xf32>, vector<16x32xf32>, vector<2x32xf32> -> vector<2x32xf32>
    %16 = vector.broadcast %14 : vector<1x32xf32> to vector<2x32xf32>
    %17 = arith.addf %15, %16 : vector<2x32xf32>
    %18 = arith.addf %12, %17 : vector<2x32xf32>
    %cst_16 = arith.constant 0.000000e+00 : f32
    %19 = vector.broadcast %cst_16 : f32 to vector<2x32xf32>
    %20 = arith.maximumf %18, %19 : vector<2x32xf32>
    %c0_17 = arith.constant 0 : index
    %c0_18 = arith.constant 0 : index
    %21 = vector.load %arg8[%c0_17, %c0_18] : memref<32x64xf32, #tpu.memory_space<vmem>>, vector<32x64xf32>
    %c0_19 = arith.constant 0 : index
    %c0_20 = arith.constant 0 : index
    %22 = vector.load %arg9[%c0_19, %c0_20] : memref<1x64xf32, #tpu.memory_space<vmem>>, vector<1x64xf32>
    %c0_21 = arith.constant 0 : index
    %c0_22 = arith.constant 0 : index
    %23 = vector.load %arg10[%c0_21, %c0_22] : memref<64x32xf32, #tpu.memory_space<vmem>>, vector<64x32xf32>
    %c0_23 = arith.constant 0 : index
    %c0_24 = arith.constant 0 : index
    %24 = vector.load %arg11[%c0_23, %c0_24] : memref<1x32xf32, #tpu.memory_space<vmem>>, vector<1x32xf32>
    %cst_25 = arith.constant dense<0.000000e+00> : vector<2x64xf32>
    %25 = tpu.matmul %20, %21, %cst_25 {dimension_numbers = #tpu.dot_dimension_numbers<[1], [0], [0], [1], [0, 0, 1, 1], [], []>} : vector<2x32xf32>, vector<32x64xf32>, vector<2x64xf32> -> vector<2x64xf32>
    %26 = vector.broadcast %22 : vector<1x64xf32> to vector<2x64xf32>
    %27 = arith.addf %25, %26 : vector<2x64xf32>
    %cst_26 = arith.constant 0.000000e+00 : f32
    %28 = vector.broadcast %cst_26 : f32 to vector<2x64xf32>
    %29 = arith.maximumf %27, %28 : vector<2x64xf32>
    %cst_27 = arith.constant dense<0.000000e+00> : vector<2x32xf32>
    %30 = tpu.matmul %29, %23, %cst_27 {dimension_numbers = #tpu.dot_dimension_numbers<[1], [0], [0], [1], [0, 0, 1, 1], [], []>} : vector<2x64xf32>, vector<64x32xf32>, vector<2x32xf32> -> vector<2x32xf32>
    %31 = vector.broadcast %24 : vector<1x32xf32> to vector<2x32xf32>
    %32 = arith.addf %30, %31 : vector<2x32xf32>
    %33 = arith.addf %32, %20 : vector<2x32xf32>
    %cst_28 = arith.constant 0.000000e+00 : f32
    %34 = vector.broadcast %cst_28 : f32 to vector<2x32xf32>
    %35 = arith.maximumf %33, %34 : vector<2x32xf32>
    %c0_29 = arith.constant 0 : index
    %c0_30 = arith.constant 0 : index
    %36 = vector.load %arg12[%c0_29, %c0_30] : memref<2x32xf32, #tpu.memory_space<vmem>>, vector<2x32xf32>
    tpu.vector_store %arg12[%c0_29, %c0_30], %35 {strides = array<i32>} : memref<2x32xf32, #tpu.memory_space<vmem>>, vector<2x32xf32>,
    return
  }
  func.func @transform_0(%arg0: i32) -> (i32, i32) {
    %c0_i32 = arith.constant 0 : i32
    %c0_i32_0 = arith.constant 0 : i32
    %c0_i32_1 = arith.constant 0 : i32
    return %c0_i32, %c0_i32_0 : i32, i32
  }
  func.func @transform_1(%arg0: i32) -> (i32, i32) {
    %c0_i32 = arith.constant 0 : i32
    %c0_i32_0 = arith.constant 0 : i32
    %c0_i32_1 = arith.constant 0 : i32
    return %c0_i32, %c0_i32_0 : i32, i32
  }
  func.func @transform_2(%arg0: i32) -> (i32, i32) {
    %c0_i32 = arith.constant 0 : i32
    %c0_i32_0 = arith.constant 0 : i32
    %c0_i32_1 = arith.constant 0 : i32
    return %c0_i32, %c0_i32_0 : i32, i32
  }
  func.func @transform_3(%arg0: i32) -> (i32, i32) {
    %c0_i32 = arith.constant 0 : i32
    %c0_i32_0 = arith.constant 0 : i32
    %c0_i32_1 = arith.constant 0 : i32
    return %c0_i32, %c0_i32_0 : i32, i32
  }
  func.func @transform_4(%arg0: i32) -> (i32, i32) {
    %c0_i32 = arith.constant 0 : i32
    %c0_i32_0 = arith.constant 0 : i32
    %c0_i32_1 = arith.constant 0 : i32
    return %c0_i32, %c0_i32_0 : i32, i32
  }
  func.func @transform_5(%arg0: i32) -> (i32, i32) {
    %c0_i32 = arith.constant 0 : i32
    %c0_i32_0 = arith.constant 0 : i32
    %c0_i32_1 = arith.constant 0 : i32
    return %c0_i32, %c0_i32_0 : i32, i32
  }
  func.func @transform_6(%arg0: i32) -> (i32, i32) {
    %c0_i32 = arith.constant 0 : i32
    %c0_i32_0 = arith.constant 0 : i32
    %c0_i32_1 = arith.constant 0 : i32
    return %c0_i32, %c0_i32_0 : i32, i32
  }
  func.func @transform_7(%arg0: i32) -> (i32, i32) {
    %c0_i32 = arith.constant 0 : i32
    %c0_i32_0 = arith.constant 0 : i32
    %c0_i32_1 = arith.constant 0 : i32
    return %c0_i32, %c0_i32_0 : i32, i32
  }
  func.func @transform_8(%arg0: i32) -> (i32, i32) {
    %c0_i32 = arith.constant 0 : i32
    %c0_i32_0 = arith.constant 0 : i32
    %c0_i32_1 = arith.constant 0 : i32
    return %c0_i32, %c0_i32_0 : i32, i32
  }
  func.func @transform_9(%arg0: i32) -> (i32, i32) {
    %c0_i32 = arith.constant 0 : i32
    %c0_i32_0 = arith.constant 0 : i32
    %c0_i32_1 = arith.constant 0 : i32
    return %c0_i32, %c0_i32_0 : i32, i32
  }
  func.func @transform_10(%arg0: i32) -> (i32, i32) {
    %c0_i32 = arith.constant 0 : i32
    %c0_i32_0 = arith.constant 0 : i32
    %c0_i32_1 = arith.constant 0 : i32
    return %c0_i32, %c0_i32_0 : i32, i32
  }
  func.func @transform_11(%arg0: i32) -> (i32, i32) {
    %c0_i32 = arith.constant 0 : i32
    %c0_i32_0 = arith.constant 0 : i32
    %c0_i32_1 = arith.constant 0 : i32
    return %c0_i32, %c0_i32_0 : i32, i32
  }
}

</mosaic_0001>

<bundles_post_ra>
// kernel: tpu_custom_call.1
= control target key start
LH: loop header
LB: loop body
LE: loop exit
PB: predicated region body
PF: predicated region fallthrough
CT: control target
= control target key end

     0   :  { %v656_v2 = vmov 0.0|0.0   ;;  %vm657_vm0 = vmmov 0   ;;  %v658_v4 = vmov 0.0   ;;  %vm58_vm1 = vcmask 130048   ;;  %s848_s0 = inlined_call_operand.vmem [shape: f32[2,16], index: 0, kind: input, shape index: {}]   ;;  %s849_s1 = inlined_call_operand.vmem [shape: f32[16,64], index: 1, kind: input, shape index: {}]   ;;  %s850_s2 = inlined_call_operand.vmem [shape: f32[1,64], index: 2, kind: input, shape index: {}]   ;;  %s851_s3 = inlined_call_operand.vmem [shape: f32[64,32], index: 3, kind: input, shape index: {}]   ;;  %s852_s4 = inlined_call_operand.vmem [shape: f32[1,32], index: 4, kind: input, shape index: {}]   ;;  %s853_s5 = inlined_call_operand.vmem [shape: f32[16,32], index: 5, kind: input, shape index: {}]   ;;  %s854_s6 = inlined_call_operand.vmem [shape: f32[1,32], index: 6, kind: input, shape index: {}]   ;;  %s855_s7 = inlined_call_operand.vmem [shape: f32[32,64], index: 7, kind: input, shape index: {}]   ;;  %s856_s8 = inlined_call_operand.vmem [shape: f32[1,64], index: 8, kind: input, shape index: {}]   ;;  %s857_s9 = inlined_call_operand.vmem [shape: f32[64,32], index: 9, kind: input, shape index: {}]   ;;  %s858_s10 = inlined_call_operand.vmem [shape: f32[1,32], index: 10, kind: input, shape index: {}]   ;;  %s859_s11 = inlined_call_operand.hbm [shape: f32[2,32], index: 11, kind: output, shape index: {}]  }
   0x1   :  { %v40_v0 = vld [vmem:[%s849_s1] sm:$0xff]  ;;  %v41_v1 = vld [vmem:[%s849_s1 + $0x8] sm:$0xff]  ;;  %588 = vmatprep.subr.bf16.mxu1 %v656_v2  ;;  %529 = vmatprep.mubr.msk.f32.mxu1 %vm657_vm0, %v658_v4 }
   0x2   :  { %v589_v3 = vpack.c.bf16 %v41_v1, %v40_v0  ;;  %v43_v5 = vld [vmem:[%s851_s3] sm:$0xff]  ;;  %v44_v6 = vld [vmem:[%s851_s3 + $0x8] sm:$0xff]  ;;  %606 = vmatprep.subr.bf16.mxu0 %v656_v2  ;;  %566 = vmatprep.mubr.msk.f32.mxu0 %vm657_vm0, %v658_v4 }
   0x3   :  { %v39_v7 = vld [vmem:[%s848_s0] sm:$0x3]  ;;  %v592_v8 = vpack.c.bf16 %v44_v6, %v43_v5 }
   0x4   :  { %590 = vmatpush3.bf16.msra.mxu1 %v589_v3 }
   0x5   :  { %16 = vsyncpa [#allocation3], 0  ;;  %591 = vmatprep.subr.bf16.mxu1 %v656_v2  ;;  %v45_v9 = vld [vmem:[%s851_s3 + $0x10] sm:$0xff]  ;;  %v46_v10 = vld [vmem:[%s851_s3 + $0x18] sm:$0xff]  ;;  %vm139_vm2 = vcmask 523264   ;;  %vm314_vm3 = vcmask 261120  }
   0x6   :  { %v595_v11 = vpack.c.bf16 %v46_v10, %v45_v9  ;;  %v47_v12 = vld [vmem:[%s851_s3 + $0x20] sm:$0xff]  ;;  %v48_v13 = vld [vmem:[%s851_s3 + $0x28] sm:$0xff]  ;;  %v49_v15 = vld [vmem:[%s851_s3 + $0x30] sm:$0xff]  ;;  %vm470_vm4 = vcmask 254976  }
   0x7   :  { %530 = vmatmul.mubr.msk.f32.vlgmr.msra.gmra.mrb[0].mxu1 %vm58_vm1, %v39_v7  ;;  %v598_v14 = vpack.c.bf16 %v48_v13, %v47_v12  ;;  %v50_v16 = vld [vmem:[%s851_s3 + $0x38] sm:$0xff]  ;;  %v294_v18 = vld [vmem:[%s855_s7] sm:$0xff]  ;;  %v295_v19 = vld [vmem:[%s855_s7 + $0x8] sm:$0xff] }
   0x8   :  { %593 = vmatpush3.bf16.msra.mxu1 %v592_v8  ;;  %548 = vmatprep.mubr.msk.f32.mxu1 %vm657_vm0, %v658_v4  ;;  %v601_v17 = vpack.c.bf16 %v50_v16, %v49_v15  ;;  %v607_v20 = vpack.c.bf16 %v295_v19, %v294_v18  ;;  %v486_v21 = vld [vmem:[%s850_s2] ss:$0 sm:$0xff]  ;;  %v214_v23 = vld [vmem:[%s853_s5 + $0x8] sm:$0xff]  ;;  %v296_v29 = vld [vmem:[%s855_s7 + $0x10] sm:$0xff] }
   0x9   :  { %594 = vmatprep.subr.bf16.mxu1 %v656_v2  ;;  %v213_v22 = vld [vmem:[%s853_s5] sm:$0xff]  ;;  %v297_v30 = vld [vmem:[%s855_s7 + $0x18] sm:$0xff]  ;;  %v300_v36 = vld [vmem:[%s857_s9 + $0x8] sm:$0xff] }
   0xa   :  { %608 = vmatpush3.bf16.msra.mxu0 %v607_v20  ;;  %v604_v27 = vpack.c.bf16 %v214_v23, %v213_v22  ;;  %v610_v31 = vpack.c.bf16 %v297_v30, %v296_v29  ;;  %v488_v32 = vld [vmem:[%s852_s4] ss:$0 sm:$0xff]  ;;  %v301_v42 = vld [vmem:[%s857_s9 + $0x10] sm:$0xff]  ;;  %v302_v43 = vld [vmem:[%s857_s9 + $0x18] sm:$0xff] }
   0xb   :  { %609 = vmatprep.subr.bf16.mxu0 %v656_v2  ;;  %v490_v33 = vld [vmem:[%s854_s6] ss:$0 sm:$0xff]  ;;  %v616_v44 = vpack.c.bf16 %v302_v43, %v301_v42  ;;  %v304_v46 = vld [vmem:[%s857_s9 + $0x28] sm:$0xff]  ;;  %v305_v48 = vld [vmem:[%s857_s9 + $0x30] sm:$0xff] }
   0xc   :  { %596 = vmatpush3.bf16.msra.mxu1 %v595_v11  ;;  %v624_v34 = vadd.f32 %v490_v33, %v488_v32  ;;  %v299_v35 = vld [vmem:[%s857_s9] sm:$0xff]  ;;  %v306_v49 = vld [vmem:[%s857_s9 + $0x38] sm:$0xff] }
   0xd   :  { %597 = vmatprep.subr.bf16.mxu1 %v656_v2  ;;  %v613_v40 = vpack.c.bf16 %v300_v36, %v299_v35  ;;  %v303_v45 = vld [vmem:[%s857_s9 + $0x20] sm:$0xff]  ;;  %v622_v50 = vpack.c.bf16 %v306_v49, %v305_v48  ;;  %s659_s9 = smov [#allocation2]  }
   0xe   :  { %611 = vmatpush3.bf16.msra.mxu0 %v610_v31  ;;  %v619_v47 = vpack.c.bf16 %v304_v46, %v303_v45  ;;  %v492_v51 = vld [vmem:[%s856_s8] ss:$0 sm:$0xff]  ;;  %s478_s26 = sshll.u32 %s659_s9, 4  ;;  %s479_s26 = int_to_ptr.vmem [resolvable:$true] %s478_s26 }
   0xf   :  { %612 = vmatprep.subr.bf16.mxu0 %v656_v2  ;;  %v494_v56 = vld [vmem:[%s858_s10] ss:$0 sm:$0xff]  ;;  %s632_s8 = scalar_lea.vmem %s479_s26, 32  ;;  %p637_p1 = scmp.lt.s32.totalorder %s479_s26, %s479_s26 }
  0x10   :  { %599 = vmatpush3.bf16.msra.mxu1 %v598_v14  ;;  %p633_p0 = scmp.ne.s32.totalorder %s479_s26, %s632_s8  ;;  %p638_p2 = scmp.lt.s32.totalorder %s632_s8, %s632_s8 }
  0x11   :  { %600 = vmatprep.subr.bf16.mxu1 %v656_v2 }
  0x12   :  { %p639_p3 = por %p638_p2, %p637_p1 }
  0x14   :  { %602 = vmatpush3.bf16.msra.mxu1 %v601_v17  ;;  %p640_p4 = pnand %p639_p3, %p633_p0 }
  0x15   :  { %603 = vmatprep.subr.bf16.mxu1 %v656_v2 }
  0xda   :  { %v128_v24 = vpop.f32.mrb[0].mxu1 }
  0xdb   :  { %v129_v25 = vadd.f32 %v486_v21, %v128_v24  ;;  %v531_v26 = vpop.f32.mrb[1].mxu1 }
  0xdd   :  { %v132_v28 = vmax.f32 %v129_v25, 0.0 }
  0xdf   :  { %549 = vmatmul.mubr.msk.f32.vlgmr.msra.gmra.mrb[2].mxu1 %vm139_vm2, %v132_v28 }
  0xe0   :  { %605 = vmatpush3.bf16.msra.mxu1 %v604_v27  ;;  %555 = vmatprep.mubr.msk.f32.mxu1 %vm657_vm0, %v658_v4 }
  0xe7   :  { %556 = vmatmul.mubr.msk.f32.vlgmr.msra.gmra.mrb[2].mxu1 %vm58_vm1, %v39_v7 }
 0x1ba   :  { %v288_v37 = vpop.f32.mrb[2].mxu1 }
 0x1bb   :  { %v625_v38 = vadd.f32 %v624_v34, %v288_v37  ;;  %v557_v39 = vpop.f32.mrb[3].mxu1 }
 0x1bd   :  { %v293_v41 = vmax.f32 %v625_v38, 0.0 }
 0x1bf   :  { %567 = vmatmul.mubr.msk.f32.vlgmr.msra.gmra.mrb[0].mxu0 %vm314_vm3, %v293_v41 }
 0x1c0   :  { %614 = vmatpush3.bf16.msra.mxu0 %v613_v40  ;;  %585 = vmatprep.mubr.msk.f32.mxu0 %vm657_vm0, %v658_v4 }
 0x1c1   :  { %615 = vmatprep.subr.bf16.mxu0 %v656_v2 }
 0x1c4   :  { %617 = vmatpush3.bf16.msra.mxu0 %v616_v44 }
 0x1c5   :  { %618 = vmatprep.subr.bf16.mxu0 %v656_v2 }
 0x1c8   :  { %620 = vmatpush3.bf16.msra.mxu0 %v619_v47 }
 0x1c9   :  { %621 = vmatprep.subr.bf16.mxu0 %v656_v2 }
 0x1cc   :  { %623 = vmatpush3.bf16.msra.mxu0 %v622_v50 }
 0x292   :  { %v384_v52 = vpop.f32.mrb[0].mxu0 }
 0x293   :  { %v385_v53 = vadd.f32 %v492_v51, %v384_v52  ;;  %v568_v54 = vpop.f32.mrb[1].mxu0 }
 0x295   :  { %v388_v55 = vmax.f32 %v385_v53, 0.0 }
 0x297   :  { %586 = vmatmul.mubr.msk.f32.vlgmr.msra.gmra.mrb[2].mxu0 %vm139_vm2, %v388_v55 }
 0x36a   :  { %v464_v57 = vpop.f32.mrb[2].mxu0 }
 0x36b   :  { %v465_v58 = vadd.f32 %v494_v56, %v464_v57  ;;  %v587_v59 = vpop.f32.mrb[3].mxu0 }
 0x36d   :  { %v468_v60 = vadd.f32 %v465_v58, %v293_v41 }
 0x36f   :  { %v469_v61 = vmax.f32 %v468_v60, 0.0 }
 0x371   :  { %471 = vst.msk [vmem:[#allocation2] sm:$0x3] %vm470_vm4, %v469_v61 }
 0x372   :  { %643 = shalt.err (!%p640_p4)
}
 0x373   :  { %s644_s10 = scalar_lea.hbm %s859_s11, 32 }
 0x374   :  { %p645_p5 = scmp.ne.s32.totalorder %s859_s11, %s644_s10  ;;  %p648_p6 = scmp.lt.u32.totalorder %s644_s10, %s859_s11 }
 0x376   :  { %p650_p7 = pnand %p648_p6, %p645_p5 }
 0x378   :  { %653 = shalt.err (!%p650_p7)
}
 0x379   :  { %481 = dma.vmem_to_hbm [thread:$0]  %s479_s26, 32, %s859_s11, [#allocation3]  }
 0x37a   :  { %654 = dma.done.wait [#allocation3], 32  }
 0x37b   :  { %655 = vsyncadd [#allocation3], 4294967264 }
 0x37c   :  { %485 = vsyncpa [#allocation3], 1 }

</bundles_post_ra>
